<compile_context>
chip_gen: v7x
topology: tpu7x:2x2x1
jax: 0.10.0
libtpu: 0.0.40
codegen_flags: <defaults>
</compile_context>

<pallas_src>
import jax
import jax.numpy as jnp
from jax.experimental import pallas as pl
from jax.experimental.pallas import tpu as pltpu


# Max points per grid step. Multiple of 128 (lane-dense output rows); large
# enough to amortize the ~0.35 us per-step pipeline overhead.
_TN_MAX = 8192


def _sdf_plane_kernel(x_ref, o_ref):
    # x_ref : (d, TN) channel-first block in VMEM (d coordinates on the
    #         sublane axis, TN points on the lane axis).
    # o_ref : (1, TN) block in VMEM.
    # SDF of the x == 0 plane: the distance is just the first coordinate row.
    # Lane-dense slice + store; no cross-lane data movement needed.
    o_ref[...] = x_ref[0:1, :]
    # TODO(synk): fetching only coordinate row 0 (in-spec block (1, TN)) would
    # cut the HBM read ~3x, but a second-minor block dim of 1 over a full dim
    # of d violates the (8,128)/full-dim tiling rule, so we DMA all d rows.


def sdf_plane(query_positions: jax.Array) -> jax.Array:
    """Pallas equivalent of SDFPlane.forward: query_positions[..., [0]]."""
    orig_shape = query_positions.shape
    d = orig_shape[-1]
    n = 1
    for s in orig_shape[:-1]:
        n *= s

    # Lane-dense tile over the point axis; don't over-pad tiny inputs.
    tn = min(_TN_MAX, pl.cdiv(max(n, 1), 128) * 128)
    n_pad = pl.cdiv(max(n, 1), tn) * tn

    # Layout plumbing: present the points channel-first (d, N) so the kernel's
    # hot path (the output store) is lane-dense. In a fused pipeline this
    # layout should be pushed upstream to the producer instead of paying the
    # transpose here.
    xt = query_positions.reshape(n, d).T            # (d, n)
    if n_pad != n:
        xt = jnp.pad(xt, ((0, 0), (0, n_pad - n)))  # (d, n_pad)

    out_row = pl.pallas_call(
        _sdf_plane_kernel,
        out_shape=jax.ShapeDtypeStruct((1, n_pad), query_positions.dtype),
        grid=(n_pad // tn,),
        in_specs=[pl.BlockSpec((d, tn), lambda i: (0, i))],
        out_specs=pl.BlockSpec((1, tn), lambda i: (0, i)),
        compiler_params=pltpu.CompilerParams(
            dimension_semantics=("parallel",)),
    )(xt)

    return out_row[0, :n].reshape(*orig_shape[:-1], 1)


if __name__ == "__main__":
    key = jax.random.PRNGKey(0)
    # batch=2, num_points=8, coords=3 (SDF query positions in R^3)
    query_positions = jax.random.normal(key, (2, 8, 3), dtype=jnp.float32)

    out = sdf_plane(query_positions)
    out = jax.block_until_ready(out)

    # Reference check against plain-JAX semantics of query_positions[..., [0]].
    ref = query_positions[..., 0:1]
    assert out.shape == (2, 8, 1), out.shape
    assert out.dtype == query_positions.dtype
    assert jnp.allclose(out, ref), "mismatch vs reference"

    print("KERNEL_OK")
</pallas_src>

<mosaic_0001>
module attributes {stable_mosaic.version = 11 : i64} {
  func.func @_sdf_plane_kernel(%arg0: i32, %arg1: memref<3x128xf32, #tpu.memory_space<vmem>>, %arg2: memref<1x128xf32, #tpu.memory_space<vmem>>) attributes {dimension_semantics = [#tpu.dimension_semantics<parallel>], iteration_bounds = array<i64: 1>, scalar_prefetch = 0 : i64, scratch_operands = 0 : i64, tpu.core_type = #tpu.core_type<tc>, window_params = [{transform_indices = @transform_0, window_bounds = array<i64: 3, 128>}, {transform_indices = @transform_1, window_bounds = array<i64: 1, 128>}]} {
    %c0 = arith.constant 0 : index
    %c0_0 = arith.constant 0 : index
    %0 = vector.load %arg1[%c0, %c0_0] : memref<3x128xf32, #tpu.memory_space<vmem>>, vector<1x128xf32>
    %c0_1 = arith.constant 0 : index
    %c0_2 = arith.constant 0 : index
    %1 = vector.load %arg2[%c0_1, %c0_2] : memref<1x128xf32, #tpu.memory_space<vmem>>, vector<1x128xf32>
    tpu.vector_store %arg2[%c0_1, %c0_2], %0 {strides = array<i32>} : memref<1x128xf32, #tpu.memory_space<vmem>>, vector<1x128xf32>,
    return
  }
  func.func @transform_0(%arg0: i32) -> (i32, i32) {
    %c0_i32 = arith.constant 0 : i32
    %c0_i32_0 = arith.constant 0 : i32
    return %c0_i32, %arg0 : i32, i32
  }
  func.func @transform_1(%arg0: i32) -> (i32, i32) {
    %c0_i32 = arith.constant 0 : i32
    %c0_i32_0 = arith.constant 0 : i32
    return %c0_i32, %arg0 : i32, i32
  }
}

</mosaic_0001>

<bundles_post_ra>
// kernel: tpu_custom_call.1
= control target key start
LH: loop header
LB: loop body
LE: loop exit
PB: predicated region body
PF: predicated region fallthrough
CT: control target
= control target key end

     0   :  { %6 = vsyncpa [#allocation3], 0  ;;  %s124_s0 = inlined_call_operand.hbm [shape: f32[3,128], index: 0, kind: input, shape index: {}]   ;;  %s125_s1 = inlined_call_operand.hbm [shape: f32[1,128], index: 1, kind: output, shape index: {}]  }
   0x1   :  { %7 = vsyncpa [#allocation4], 0  ;;  %s88_s6 = smov [#allocation2]   ;;  %s40_s10 = scalar_lea.hbm %s124_s0, 64 }
   0x2   :  { %s14_s7 = sshll.u32 %s88_s6, 4  ;;  %p41_p0 = scmp.ne.s32.totalorder %s124_s0, %s40_s10  ;;  %s15_s7 = int_to_ptr.vmem [resolvable:$true] %s14_s7 }
   0x3   :  { %p44_p1 = scmp.lt.u32.totalorder %s40_s10, %s124_s0 }
   0x5   :  { %p46_p2 = pnand %p44_p1, %p41_p0 }
   0x7   :  { %49 = shalt.err (!%p46_p2)
}
   0x8   :  { %s50_s15 = scalar_lea.vmem %s15_s7, 64  ;;  %p55_p4 = scmp.lt.s32.totalorder %s15_s7, %s15_s7 }
   0x9   :  { %p51_p3 = scmp.ne.s32.totalorder %s15_s7, %s50_s15  ;;  %p56_p5 = scmp.lt.s32.totalorder %s50_s15, %s50_s15 }
   0xb   :  { %p57_p6 = por %p56_p5, %p55_p4 }
   0xd   :  { %p58_p7 = pnand %p57_p6, %p51_p3 }
   0xf   :  { %61 = shalt.err (!%p58_p7)
}
  0x10   :  { %17 = dma.hbm_to_vmem [thread:$0]  %s124_s0, 64, %s15_s7, [#allocation3]  }
  0x11   :  { %84 = dma.done.wait [#allocation3], 64  }
  0x12   :  { %85 = vsyncadd [#allocation3], 4294967232  ;;  %s89_s18 = smov [#allocation5]   ;;  %v21_v0 = vld [vmem:[#allocation2] sm:$0x1] }
  0x13   :  { %s29_s19 = sshll.u32 %s89_s18, 4  ;;  %22 = vst [vmem:[#allocation5] sm:$0x1] %v21_v0  ;;  %s30_s19 = int_to_ptr.vmem [resolvable:$true] %s29_s19 }
  0x14   :  { %s62_s20 = scalar_lea.vmem %s30_s19, 16  ;;  %s66_s21 = scalar_lea.vmem %s30_s19, 32 }
  0x15   :  { %p63_p8 = scmp.ne.s32.totalorder %s30_s19, %s62_s20  ;;  %p67_p9 = scmp.lt.s32.totalorder %s30_s19, %s30_s19 }
  0x16   :  { %p68_p10 = scmp.lt.s32.totalorder %s66_s21, %s62_s20 }
  0x18   :  { %p69_p11 = por %p68_p10, %p67_p9 }
  0x1a   :  { %p70_p12 = pnand %p69_p11, %p63_p8 }
  0x1c   :  { %73 = shalt.err (!%p70_p12)
}
  0x1d   :  { %s74_s24 = scalar_lea.hbm %s125_s1, 16 }
  0x1e   :  { %p75_p13 = scmp.ne.s32.totalorder %s125_s1, %s74_s24  ;;  %p78_p0 = scmp.lt.u32.totalorder %s74_s24, %s125_s1 }
  0x20   :  { %p80_p1 = pnand %p78_p0, %p75_p13 }
  0x22   :  { %83 = shalt.err (!%p80_p1)
}
  0x23   :  { %32 = dma.vmem_to_hbm [thread:$0]  %s30_s19, 16, %s125_s1, [#allocation4]  }
  0x24   :  { %86 = dma.done.wait [#allocation4], 16  }
  0x25   :  { %87 = vsyncadd [#allocation4], 4294967280 }
  0x26   :  { %36 = vsyncpa [#allocation3], 1 }
  0x27   :  { %37 = vsyncpa [#allocation4], 1 }

</bundles_post_ra>
